<compile_context>
chip_gen: v6e
topology: v6e:2x2x1
jax: 0.10.0
libtpu: 0.0.40
codegen_flags: <defaults>
</compile_context>

<pallas_src>
import math

import jax
import jax.numpy as jnp
from jax import lax
from jax.experimental import pallas as pl
from jax.experimental.pallas import tpu as pltpu

LANE = 128    # lane width (last dim of a vreg)
SUB = 8       # sublane count
SUB_TM = 128  # rows processed per in-kernel sub-block (bounds vreg pressure)


def _round_up(x, m):
    return (x + m - 1) // m * m


# ---------------------------------------------------------------------------
# Kernel
# ---------------------------------------------------------------------------
def actor_kernel(state_ref, w1_ref, w2_ref, w3_ref, b12_ref, bA_ref, out_ref):
    # state_ref: [TM, D_pad] f32   one batch tile (D_pad = round_up(input_dims, 8))
    # w1_ref:    [D_pad, H]  bf16  fc1 weights  (H = round_up(max(fc1,fc2), 128))
    # w2_ref:    [H, H]      bf16  fc2 weights
    # w3_ref:    [H, A]      bf16  mu head weights (A = n_actions, un-padded)
    # b12_ref:   [8, H]      f32   row 0 = b1, row 1 = b2
    # bA_ref:    [8, A]      f32   row 0 = b3, row 1 = action_bound
    # out_ref:   [TM, A]     f32   actions
    w1 = w1_ref[...]
    w2 = w2_ref[...]
    w3 = w3_ref[...]
    b1 = b12_ref[0:1, :]
    b2 = b12_ref[1:2, :]
    b3 = bA_ref[0:1, :]
    bound = bA_ref[1:2, :]

    n_sub = state_ref.shape[0] // SUB_TM  # static (TM is a multiple of SUB_TM)

    def body(s, carry):
        r = pl.multiple_of(s * SUB_TM, SUB_TM)

        # fc1 + ReLU (bf16 matmul inputs, f32 accumulation + epilogue)
        x = state_ref[pl.ds(r, SUB_TM), :].astype(jnp.bfloat16)
        h = jnp.dot(x, w1, preferred_element_type=jnp.float32) + b1
        h = jnp.maximum(h, 0.0).astype(jnp.bfloat16)

        # fc2 + ReLU
        h = jnp.dot(h, w2, preferred_element_type=jnp.float32) + b2
        h = jnp.maximum(h, 0.0).astype(jnp.bfloat16)

        # mu head + tanh, scaled by action_bound
        mu = jnp.tanh(jnp.dot(h, w3, preferred_element_type=jnp.float32) + b3)
        out_ref[pl.ds(r, SUB_TM), :] = bound * mu
        return carry

    lax.fori_loop(0, n_sub, body, 0, unroll=True)


# ---------------------------------------------------------------------------
# Wrapper
# ---------------------------------------------------------------------------
@jax.jit
def actor_forward(state, w1_p, w2_p, w3_p, b12, bA):
    """state: [B, input_dims] f32 -> actions [B, n_actions] f32."""
    B, D = state.shape
    D_pad = w1_p.shape[0]
    H = w2_p.shape[0]
    A = w3_p.shape[1]

    # Pad the feature dim only up to a sublane multiple (NO lane padding).
    if D_pad != D:
        state = jnp.pad(state, ((0, 0), (0, D_pad - D)))

    # --- batch tiling -------------------------------------------------------
    # Small batches -> a single 128-row grid step (latency path).
    # Large batches -> an even number (>=2) of grid steps so v7x's 2 TCs both
    # get work, with <=512-row tiles; the in-kernel sub-block loop bounds vreg
    # pressure regardless of tile size.
    n_sub = max(1, -(-B // SUB_TM))          # total 128-row sub-blocks
    if n_sub == 1:
        sub_per_tile = 1
    else:
        if n_sub % 2:
            n_sub += 1
        sub_per_tile = min(4, n_sub // 2)
        while n_sub % sub_per_tile:
            sub_per_tile -= 1
    TM = SUB_TM * sub_per_tile
    Bp = SUB_TM * n_sub

    # Pad ONLY the batch axis (padded rows are sliced off below).
    if Bp != B:
        state = jnp.pad(state, ((0, Bp - B), (0, 0)))

    out = pl.pallas_call(
        actor_kernel,
        out_shape=jax.ShapeDtypeStruct((Bp, A), jnp.float32),
        grid_spec=pltpu.PrefetchScalarGridSpec(
            num_scalar_prefetch=0,
            grid=(Bp // TM,),
            in_specs=[
                # batch tile marches down the grid
                pl.BlockSpec((TM, D_pad), lambda i: (i, 0)),
                # per-layer weights / biases: constant block index -> VMEM-resident
                pl.BlockSpec((D_pad, H), lambda i: (0, 0)),
                pl.BlockSpec((H, H), lambda i: (0, 0)),
                pl.BlockSpec((H, A), lambda i: (0, 0)),
                pl.BlockSpec((SUB, H), lambda i: (0, 0)),
                pl.BlockSpec((SUB, A), lambda i: (0, 0)),
            ],
            # output written directly at its true width (n_actions)
            out_specs=pl.BlockSpec((TM, A), lambda i: (i, 0)),
        ),
        compiler_params=pltpu.CompilerParams(
            dimension_semantics=("parallel",)),
    )(state, w1_p, w2_p, w3_p, b12, bA)

    return out[:B]


# ---------------------------------------------------------------------------
# Param init + packing (one-time, outside the per-call hot path)
# ---------------------------------------------------------------------------
def init_params(key, input_dims, fc1_dims, fc2_dims, n_actions, action_bound):
    """Mimics nn.Linear's U(-1/sqrt(fan_in), 1/sqrt(fan_in)) init.
    Weights stored as [in_features, out_features] (transpose of PyTorch)."""
    keys = jax.random.split(key, 6)

    def linear(kw, kb, fan_in, fan_out):
        bnd = 1.0 / math.sqrt(fan_in)
        w = jax.random.uniform(kw, (fan_in, fan_out), jnp.float32, -bnd, bnd)
        b = jax.random.uniform(kb, (1, fan_out), jnp.float32, -bnd, bnd)
        return w, b

    w1, b1 = linear(keys[0], keys[1], input_dims, fc1_dims)
    w2, b2 = linear(keys[2], keys[3], fc1_dims, fc2_dims)
    w3, b3 = linear(keys[4], keys[5], fc2_dims, n_actions)
    return {
        "w1": w1, "b1": b1,
        "w2": w2, "b2": b2,
        "w3": w3, "b3": b3,
        "action_bound": jnp.asarray(action_bound, jnp.float32).reshape(1, n_actions),
    }


def pack_params(params):
    """Per-layer TPU slabs: bf16 weights (zero-padded to sublane/lane multiples
    where needed), f32 biases + action_bound packed into two small slabs."""
    w1, b1 = params["w1"], params["b1"]
    w2, b2 = params["w2"], params["b2"]
    w3, b3 = params["w3"], params["b3"]
    bound = params["action_bound"]

    D, F1 = w1.shape
    F2 = w2.shape[1]
    A = w3.shape[1]
    D_pad = _round_up(D, SUB)
    H = _round_up(max(F1, F2), LANE)

    w1_p = jnp.zeros((D_pad, H), jnp.bfloat16).at[:D, :F1].set(w1.astype(jnp.bfloat16))
    w2_p = jnp.zeros((H, H), jnp.bfloat16).at[:F1, :F2].set(w2.astype(jnp.bfloat16))
    w3_p = jnp.zeros((H, A), jnp.bfloat16).at[:F2, :].set(w3.astype(jnp.bfloat16))

    b12 = jnp.zeros((SUB, H), jnp.float32)
    b12 = b12.at[0, :F1].set(b1[0]).at[1, :F2].set(b2[0])
    bA = jnp.zeros((SUB, A), jnp.float32)
    bA = bA.at[0, :].set(b3[0]).at[1, :].set(bound[0])

    return {"w1": w1_p, "w2": w2_p, "w3": w3_p, "b12": b12, "bA": bA}


# ---------------------------------------------------------------------------
# References
# ---------------------------------------------------------------------------
def reference_forward_f32(state, params):
    """Module semantics in f32 (what the PyTorch module computes)."""
    h1 = jnp.maximum(state @ params["w1"] + params["b1"], 0.0)
    h2 = jnp.maximum(h1 @ params["w2"] + params["b2"], 0.0)
    return params["action_bound"] * jnp.tanh(h2 @ params["w3"] + params["b3"])


def reference_forward_bf16(state, params):
    """Same computation with the kernel's mixed precision (bf16 matmul inputs,
    f32 accumulation + epilogue) for a tight numerical check."""
    x = state.astype(jnp.bfloat16)
    h = jnp.dot(x, params["w1"].astype(jnp.bfloat16),
                preferred_element_type=jnp.float32) + params["b1"]
    h = jnp.maximum(h, 0.0).astype(jnp.bfloat16)
    h = jnp.dot(h, params["w2"].astype(jnp.bfloat16),
                preferred_element_type=jnp.float32) + params["b2"]
    h = jnp.maximum(h, 0.0).astype(jnp.bfloat16)
    mu = jnp.tanh(jnp.dot(h, params["w3"].astype(jnp.bfloat16),
                          preferred_element_type=jnp.float32) + params["b3"])
    return params["action_bound"] * mu


if __name__ == "__main__":
    # Small shapes consistent with the module: state vector in, action vector out.
    input_dims = 8       # *self.input_dims
    fc1_dims = 32
    fc2_dims = 32
    n_act = 4

    key = jax.random.PRNGKey(0)
    k_state, k_params, k_big = jax.random.split(key, 3)

    action_bound = jnp.array([2.0, 1.0, 0.5, 3.0], jnp.float32)
    params = init_params(k_params, input_dims, fc1_dims, fc2_dims, n_act, action_bound)
    packed = pack_params(params)

    def run(state):
        return actor_forward(state, packed["w1"], packed["w2"], packed["w3"],
                             packed["b12"], packed["bA"])

    # --- small batch (typical RL actor call): single grid step --------------
    batch = 2
    state = jax.random.normal(k_state, (batch, input_dims), jnp.float32)
    out = jax.block_until_ready(run(state))
    assert out.shape == (batch, n_act)
    assert jnp.allclose(out, reference_forward_bf16(state, params), atol=1e-2, rtol=1e-2), \
        "small-batch mismatch vs bf16-matched reference"
    assert jnp.allclose(out, reference_forward_f32(state, params), atol=1.5e-1), \
        "small-batch mismatch vs f32 module reference"

    # --- larger batch: exercises multiple (even) grid tiles + in-kernel loop -
    big_batch = 512
    state_big = jax.random.normal(k_big, (big_batch, input_dims), jnp.float32)
    out_big = jax.block_until_ready(run(state_big))
    assert out_big.shape == (big_batch, n_act)
    assert jnp.allclose(out_big, reference_forward_bf16(state_big, params), atol=1e-2, rtol=1e-2), \
        "big-batch mismatch vs bf16-matched reference"
    assert jnp.allclose(out_big, reference_forward_f32(state_big, params), atol=1.5e-1), \
        "big-batch mismatch vs f32 module reference"

    print("KERNEL_OK")
</pallas_src>

<mosaic_0001>
module attributes {stable_mosaic.version = 11 : i64} {
  func.func @actor_kernel(%arg0: i32, %arg1: memref<128x8xf32, #tpu.memory_space<vmem>>, %arg2: memref<8x128xbf16, #tpu.memory_space<vmem>>, %arg3: memref<128x128xbf16, #tpu.memory_space<vmem>>, %arg4: memref<128x4xbf16, #tpu.memory_space<vmem>>, %arg5: memref<8x128xf32, #tpu.memory_space<vmem>>, %arg6: memref<8x4xf32, #tpu.memory_space<vmem>>, %arg7: memref<128x4xf32, #tpu.memory_space<vmem>>) attributes {dimension_semantics = [#tpu.dimension_semantics<parallel>], iteration_bounds = array<i64: 1>, scalar_prefetch = 0 : i64, scratch_operands = 0 : i64, tpu.core_type = #tpu.core_type<tc>, window_params = [{transform_indices = @transform_0, window_bounds = array<i64: 128, 8>}, {pipeline_mode = #tpu.pipeline_mode<synchronous>, transform_indices = @transform_1, window_bounds = array<i64: 8, 128>}, {pipeline_mode = #tpu.pipeline_mode<synchronous>, transform_indices = @transform_2, window_bounds = array<i64: 128, 128>}, {pipeline_mode = #tpu.pipeline_mode<synchronous>, transform_indices = @transform_3, window_bounds = array<i64: 128, 4>}, {pipeline_mode = #tpu.pipeline_mode<synchronous>, transform_indices = @transform_4, window_bounds = array<i64: 8, 128>}, {pipeline_mode = #tpu.pipeline_mode<synchronous>, transform_indices = @transform_5, window_bounds = array<i64: 8, 4>}, {transform_indices = @transform_6, window_bounds = array<i64: 128, 4>}]} {
    %c0 = arith.constant 0 : index
    %c0_0 = arith.constant 0 : index
    %0 = vector.load %arg2[%c0, %c0_0] : memref<8x128xbf16, #tpu.memory_space<vmem>>, vector<8x128xbf16>
    %c0_1 = arith.constant 0 : index
    %c0_2 = arith.constant 0 : index
    %1 = vector.load %arg3[%c0_1, %c0_2] : memref<128x128xbf16, #tpu.memory_space<vmem>>, vector<128x128xbf16>
    %c0_3 = arith.constant 0 : index
    %c0_4 = arith.constant 0 : index
    %2 = vector.load %arg4[%c0_3, %c0_4] : memref<128x4xbf16, #tpu.memory_space<vmem>>, vector<128x4xbf16>
    %c0_5 = arith.constant 0 : index
    %c0_6 = arith.constant 0 : index
    %3 = vector.load %arg5[%c0_5, %c0_6] : memref<8x128xf32, #tpu.memory_space<vmem>>, vector<1x128xf32>
    %c1 = arith.constant 1 : index
    %c0_7 = arith.constant 0 : index
    %4 = vector.load %arg5[%c1, %c0_7] : memref<8x128xf32, #tpu.memory_space<vmem>>, vector<1x128xf32>
    %c0_8 = arith.constant 0 : index
    %c0_9 = arith.constant 0 : index
    %5 = vector.load %arg6[%c0_8, %c0_9] : memref<8x4xf32, #tpu.memory_space<vmem>>, vector<1x4xf32>
    %c1_10 = arith.constant 1 : index
    %c0_11 = arith.constant 0 : index
    %6 = vector.load %arg6[%c1_10, %c0_11] : memref<8x4xf32, #tpu.memory_space<vmem>>, vector<1x4xf32>
    %c0_i32 = arith.constant 0 : i32
    %c128_i32 = arith.constant 128 : i32
    %7 = arith.muli %c0_i32, %c128_i32 : i32
    %8 = tpu.assume_multiple %7, 128 : i32
    %9 = arith.index_cast %8 : i32 to index
    %c0_12 = arith.constant 0 : index
    %10 = vector.load %arg1[%9, %c0_12] : memref<128x8xf32, #tpu.memory_space<vmem>>, vector<128x8xf32>
    %11 = arith.truncf %10 : vector<128x8xf32> to vector<128x8xbf16>
    %cst = arith.constant dense<0.000000e+00> : vector<128x128xf32>
    %12 = tpu.matmul %11, %0, %cst {dimension_numbers = #tpu.dot_dimension_numbers<[1], [0], [0], [1], [0, 0, 1, 1], [], []>} : vector<128x8xbf16>, vector<8x128xbf16>, vector<128x128xf32> -> vector<128x128xf32>
    %13 = vector.broadcast %3 : vector<1x128xf32> to vector<128x128xf32>
    %14 = arith.addf %12, %13 : vector<128x128xf32>
    %cst_13 = arith.constant 0.000000e+00 : f32
    %15 = vector.broadcast %cst_13 : f32 to vector<128x128xf32>
    %16 = arith.maximumf %14, %15 : vector<128x128xf32>
    %17 = arith.truncf %16 : vector<128x128xf32> to vector<128x128xbf16>
    %cst_14 = arith.constant dense<0.000000e+00> : vector<128x128xf32>
    %18 = tpu.matmul %17, %1, %cst_14 {dimension_numbers = #tpu.dot_dimension_numbers<[1], [0], [0], [1], [0, 0, 1, 1], [], []>} : vector<128x128xbf16>, vector<128x128xbf16>, vector<128x128xf32> -> vector<128x128xf32>
    %19 = vector.broadcast %4 : vector<1x128xf32> to vector<128x128xf32>
    %20 = arith.addf %18, %19 : vector<128x128xf32>
    %cst_15 = arith.constant 0.000000e+00 : f32
    %21 = vector.broadcast %cst_15 : f32 to vector<128x128xf32>
    %22 = arith.maximumf %20, %21 : vector<128x128xf32>
    %23 = arith.truncf %22 : vector<128x128xf32> to vector<128x128xbf16>
    %cst_16 = arith.constant dense<0.000000e+00> : vector<128x4xf32>
    %24 = tpu.matmul %23, %2, %cst_16 {dimension_numbers = #tpu.dot_dimension_numbers<[1], [0], [0], [1], [0, 0, 1, 1], [], []>} : vector<128x128xbf16>, vector<128x4xbf16>, vector<128x4xf32> -> vector<128x4xf32>
    %25 = vector.broadcast %5 : vector<1x4xf32> to vector<128x4xf32>
    %26 = arith.addf %24, %25 : vector<128x4xf32>
    %27 = math.tanh %26 : vector<128x4xf32>
    %28 = vector.broadcast %6 : vector<1x4xf32> to vector<128x4xf32>
    %29 = arith.mulf %28, %27 : vector<128x4xf32>
    %30 = arith.index_cast %8 : i32 to index
    %c0_17 = arith.constant 0 : index
    %31 = vector.load %arg7[%30, %c0_17] : memref<128x4xf32, #tpu.memory_space<vmem>>, vector<128x4xf32>
    tpu.vector_store %arg7[%30, %c0_17], %29 {strides = array<i32>} : memref<128x4xf32, #tpu.memory_space<vmem>>, vector<128x4xf32>,
    %c1_i32 = arith.constant 1 : i32
    return
  }
  func.func @transform_0(%arg0: i32) -> (i32, i32) {
    %c0_i32 = arith.constant 0 : i32
    %c0_i32_0 = arith.constant 0 : i32
    return %arg0, %c0_i32 : i32, i32
  }
  func.func @transform_1(%arg0: i32) -> (i32, i32) {
    %c0_i32 = arith.constant 0 : i32
    %c0_i32_0 = arith.constant 0 : i32
    %c0_i32_1 = arith.constant 0 : i32
    return %c0_i32, %c0_i32_0 : i32, i32
  }
  func.func @transform_2(%arg0: i32) -> (i32, i32) {
    %c0_i32 = arith.constant 0 : i32
    %c0_i32_0 = arith.constant 0 : i32
    %c0_i32_1 = arith.constant 0 : i32
    return %c0_i32, %c0_i32_0 : i32, i32
  }
  func.func @transform_3(%arg0: i32) -> (i32, i32) {
    %c0_i32 = arith.constant 0 : i32
    %c0_i32_0 = arith.constant 0 : i32
    %c0_i32_1 = arith.constant 0 : i32
    return %c0_i32, %c0_i32_0 : i32, i32
  }
  func.func @transform_4(%arg0: i32) -> (i32, i32) {
    %c0_i32 = arith.constant 0 : i32
    %c0_i32_0 = arith.constant 0 : i32
    %c0_i32_1 = arith.constant 0 : i32
    return %c0_i32, %c0_i32_0 : i32, i32
  }
  func.func @transform_5(%arg0: i32) -> (i32, i32) {
    %c0_i32 = arith.constant 0 : i32
    %c0_i32_0 = arith.constant 0 : i32
    %c0_i32_1 = arith.constant 0 : i32
    return %c0_i32, %c0_i32_0 : i32, i32
  }
  func.func @transform_6(%arg0: i32) -> (i32, i32) {
    %c0_i32 = arith.constant 0 : i32
    %c0_i32_0 = arith.constant 0 : i32
    return %arg0, %c0_i32 : i32, i32
  }
}

</mosaic_0001>

<bundles_post_ra>
// kernel: actor_forward.1
= control target key start
LH: loop header
LB: loop body
LE: loop exit
PB: predicated region body
PF: predicated region fallthrough
CT: control target
= control target key end

     0   :  { %vm114_vm0 = vcmask 1043456   ;;  %vm89_vm1 = vcmask 64512   ;;  %vm597_vm2 = vcmask 31744   ;;  %s1072_s1 = inlined_call_operand.vmem [shape: bf16[8,128], index: 1, kind: input, shape index: {}]   ;;  %s1073_s0 = inlined_call_operand.vmem [shape: f32[128,8], index: 0, kind: input, shape index: {}]   ;;  %s1074_s2 = inlined_call_operand.vmem [shape: bf16[128,128], index: 2, kind: input, shape index: {}]   ;;  %s1075_s3 = inlined_call_operand.vmem [shape: bf16[128,4], index: 3, kind: input, shape index: {}]   ;;  %s1076_s4 = inlined_call_operand.vmem [shape: f32[8,128], index: 4, kind: input, shape index: {}]   ;;  %s1077_s5 = inlined_call_operand.vmem [shape: f32[8,4], index: 5, kind: input, shape index: {}]   ;;  %s1078_s6 = inlined_call_operand.vmem [shape: f32[128,4], index: 6, kind: output, shape index: {}]  }
   0x1   :  { %v24_v0 = vld [vmem:[%s1072_s1] sm:$0xf]  ;;  %v62_v2 = vld [vmem:[%s1073_s0 + $0x8] sm:$0xff]  ;;  %v63_v5 = vld [vmem:[%s1073_s0 + $0x10] sm:$0xff] }
   0x2   :  { %v61_v1 = vld [vmem:[%s1073_s0] sm:$0xff]  ;;  %769 = vmatprep.subr.msk.bf16.mxu0 %vm114_vm0, %v24_v0  ;;  %v116_v3 = vsel %vm114_vm0, %v24_v0, 0  ;;  %v64_v6 = vld [vmem:[%s1073_s0 + $0x18] sm:$0xff]  ;;  %v66_v9 = vld [vmem:[%s1073_s0 + $0x28] sm:$0xff] }
   0x3   :  { %v77_v4 = vpack.c.bf16 %v62_v2, %v61_v1  ;;  %v65_v7 = vld [vmem:[%s1073_s0 + $0x20] sm:$0xff]  ;;  %688 = vmatpush3.bf16.msra.mxu0 %v116_v3  ;;  %v78_v8 = vpack.c.bf16 %v64_v6, %v63_v5  ;;  %v67_v11 = vld [vmem:[%s1073_s0 + $0x30] sm:$0xff]  ;;  %v68_v12 = vld [vmem:[%s1073_s0 + $0x38] sm:$0xff] }
   0x4   :  { %v79_v10 = vpack.c.bf16 %v66_v9, %v65_v7  ;;  %v69_v13 = vld [vmem:[%s1073_s0 + $0x40] sm:$0xff]  ;;  %v70_v14 = vld [vmem:[%s1073_s0 + $0x48] sm:$0xff]  ;;  %v770_v15 = vld [vmem:[%s1074_s2 + $0x38] sm:$0xff]   ;;  %v80_v17 = vpack.c.bf16 %v68_v12, %v67_v11 }
   0x5   :  { %689 = vmatprep.mubr.msk.bf16.mxu0 %vm89_vm1, %v77_v4  ;;  %v771_v16 = vld [vmem:[%s1074_s2 + $0x30] sm:$0xff]   ;;  %705 = vmatprep.subr.bf16.mxu1 %v770_v15  ;;  %v81_v18 = vpack.c.bf16 %v70_v14, %v69_v13  ;;  %v772_v19 = vld [vmem:[%s1074_s2 + $0x28] sm:$0xff]   ;;  %v72_v21 = vld [vmem:[%s1073_s0 + $0x58] sm:$0xff] }
   0x6   :  { %690 = vmatmul.mubr.msk.bf16.vlgmr.msra.gmra.mxu0 %vm89_vm1, %v78_v8  ;;  %706 = vmatpush3.bf16.msra.mxu1 %v770_v15  ;;  %v71_v20 = vld [vmem:[%s1073_s0 + $0x50] sm:$0xff]  ;;  %v773_v22 = vld [vmem:[%s1074_s2 + $0x20] sm:$0xff]   ;;  %v74_v24 = vld [vmem:[%s1073_s0 + $0x68] sm:$0xff] }
   0x7   :  { %693 = vmatprep.mubr.msk.bf16.mxu0 %vm89_vm1, %v79_v10  ;;  %707 = vmatprep.subr.bf16.mxu1 %v771_v16  ;;  %v73_v23 = vld [vmem:[%s1073_s0 + $0x60] sm:$0xff]  ;;  %v82_v25 = vpack.c.bf16 %v72_v21, %v71_v20  ;;  %v774_v27 = vld [vmem:[%s1074_s2 + $0x18] sm:$0xff]   ;;  %v75_v28 = vld [vmem:[%s1073_s0 + $0x70] sm:$0xff] }
   0x8   :  { %v83_v26 = vpack.c.bf16 %v74_v24, %v73_v23  ;;  %v76_v29 = vld [vmem:[%s1073_s0 + $0x78] sm:$0xff]  ;;  %v775_v31 = vld [vmem:[%s1074_s2 + $0x10] sm:$0xff]   ;;  %v776_v32 = vld [vmem:[%s1074_s2 + $0x8] sm:$0xff]  }
   0x9   :  { %v84_v30 = vpack.c.bf16 %v76_v29, %v75_v28  ;;  %v777_v33 = vld [vmem:[%s1074_s2] sm:$0xff]   ;;  %v778_v34 = vld [vmem:[%s1075_s3 + $0x38] sm:$0xff]   ;;  %v779_v35 = vld [vmem:[%s1075_s3 + $0x30] sm:$0xff]  }
   0xa   :  { %708 = vmatpush3.bf16.msra.mxu1 %v771_v16  ;;  %737 = vmatprep.subr.bf16.mxu0 %v778_v34  ;;  %v780_v36 = vld [vmem:[%s1075_s3 + $0x28] sm:$0xff]   ;;  %v781_v37 = vld [vmem:[%s1075_s3 + $0x20] sm:$0xff]   ;;  %v782_v38 = vld [vmem:[%s1075_s3 + $0x18] sm:$0xff]  }
   0xb   :  { %709 = vmatprep.subr.bf16.mxu1 %v772_v19  ;;  %738 = vmatpush3.bf16.msra.mxu0 %v778_v34  ;;  %v618_v41 = vld [vmem:[%s1076_s4] ss:$0 sm:$0xff] }
   0xc   :  { %739 = vmatprep.subr.bf16.mxu0 %v779_v35  ;;  %v785_v34 = vld [vmem:[%s1075_s3] sm:$0xff]  }
   0xe   :  { %694 = vmatmul.mubr.msk.bf16.gmra.mxu0 %vm89_vm1, %v80_v17  ;;  %710 = vmatpush3.bf16.msra.mxu1 %v772_v19 }
   0xf   :  { %697 = vmatprep.mubr.msk.bf16.mxu0 %vm89_vm1, %v81_v18  ;;  %711 = vmatprep.subr.bf16.mxu1 %v773_v22 }
  0x10   :  { %740 = vmatpush3.bf16.msra.mxu0 %v779_v35 }
  0x11   :  { %741 = vmatprep.subr.bf16.mxu0 %v780_v36 }
  0x12   :  { %712 = vmatpush3.bf16.msra.mxu1 %v773_v22 }
  0x13   :  { %713 = vmatprep.subr.bf16.mxu1 %v774_v27 }
  0x14   :  { %742 = vmatpush3.bf16.msra.mxu0 %v780_v36 }
  0x15   :  { %743 = vmatprep.subr.bf16.mxu0 %v781_v37 }
  0x16   :  { %698 = vmatmul.mubr.msk.bf16.gmra.mxu0 %vm89_vm1, %v82_v25  ;;  %714 = vmatpush3.bf16.msra.mxu1 %v774_v27 }
  0x17   :  { %701 = vmatprep.mubr.msk.bf16.mxu0 %vm89_vm1, %v83_v26  ;;  %715 = vmatprep.subr.bf16.mxu1 %v775_v31 }
  0x18   :  { %744 = vmatpush3.bf16.msra.mxu0 %v781_v37  ;;  %v627_v37 = vld [vmem:[%s1076_s4 + $0x1] ss:$0 sm:$0xff] }
  0x19   :  { %745 = vmatprep.subr.bf16.mxu0 %v782_v38 }
  0x1a   :  { %716 = vmatpush3.bf16.msra.mxu1 %v775_v31 }
  0x1b   :  { %717 = vmatprep.subr.bf16.mxu1 %v776_v32 }
  0x1c   :  { %746 = vmatpush3.bf16.msra.mxu0 %v782_v38 }
  0x1e   :  { %702 = vmatmul.mubr.msk.bf16.gmra.mxu0 %vm89_vm1, %v84_v30  ;;  %718 = vmatpush3.bf16.msra.mxu1 %v776_v32  ;;  %v783_v32 = vld [vmem:[%s1075_s3 + $0x10] sm:$0xff]  }
  0x1f   :  { %719 = vmatprep.subr.bf16.mxu1 %v777_v33  ;;  %747 = vmatprep.subr.bf16.mxu0 %v783_v32 }
  0x20   :  { %748 = vmatpush3.bf16.msra.mxu0 %v783_v32 }
  0x22   :  { %720 = vmatpush3.bf16.msra.mxu1 %v777_v33  ;;  %v784_v33 = vld [vmem:[%s1075_s3 + $0x8] sm:$0xff]  }
  0x23   :  { %749 = vmatprep.subr.bf16.mxu0 %v784_v33 }
  0x24   :  { %750 = vmatpush3.bf16.msra.mxu0 %v784_v33 }
  0x25   :  { %751 = vmatprep.subr.bf16.mxu0 %v785_v34 }
  0x28   :  { %752 = vmatpush3.bf16.msra.mxu0 %v785_v34 }
  0xc6   :  { %v691_v39 = vpop.f32.mrf.mxu0 }
  0xc7   :  { %v161_v45 = vadd.f32 %v691_v39, %v618_v41 }
  0xc8   :  { %v152_v40 = vpop.f32.mrf.mxu0 }
  0xc9   :  { %v153_v43 = vadd.f32 %v618_v41, %v152_v40  ;;  %v217_v52 = vmax.f32 %v161_v45, 0.0 }
  0xca   :  { %v692_v42 = vpop.f32.mrf.mxu0 }
  0xcb   :  { %v164_v44 = vadd.f32 %v692_v42, %v618_v41  ;;  %v215_v50 = vmax.f32 %v153_v43, 0.0 }
  0xcc   :  { %v155_v46 = vpop.f32.mrf.mxu0 }
  0xcd   :  { %v156_v47 = vadd.f32 %v618_v41, %v155_v46  ;;  %v218_v48 = vmax.f32 %v164_v44, 0.0 }
  0xce   :  { %v695_v49 = vpop.f32.mrf.mxu0 }
  0xcf   :  { %v216_v51 = vmax.f32 %v156_v47, 0.0  ;;  %v232_v55 = vpack.c.bf16 %v218_v48, %v217_v52  ;;  %v177_v59 = vadd.f32 %v695_v49, %v618_v41 }
  0xd0   :  { %v168_v53 = vpop.f32.mrf.mxu0 }
  0xd1   :  { %v231_v54 = vpack.c.bf16 %v216_v51, %v215_v50  ;;  %v169_v57 = vadd.f32 %v618_v41, %v168_v53  ;;  %v221_v2 = vmax.f32 %v177_v59, 0.0 }
  0xd2   :  { %v696_v56 = vpop.f32.mrf.mxu0 }
  0xd3   :  { %v180_v58 = vadd.f32 %v696_v56, %v618_v41  ;;  %721 = vmatprep.mubr.bf16.mxu1 %v231_v54  ;;  %v219_v0 = vmax.f32 %v169_v57, 0.0 }
  0xd4   :  { %v171_v60 = vpop.f32.mrf.mxu0  ;;  %722 = vmatmul.mubr.bf16.vlgmr.msra.gmra.mxu1 %v232_v55 }
  0xd5   :  { %v172_v61 = vadd.f32 %v618_v41, %v171_v60  ;;  %v222_v62 = vmax.f32 %v180_v58, 0.0 }
  0xd6   :  { %v699_v63 = vpop.f32.mrf.mxu0 }
  0xd7   :  { %v220_v1 = vmax.f32 %v172_v61, 0.0  ;;  %v234_v5 = vpack.c.bf16 %v222_v62, %v221_v2  ;;  %v193_v9 = vadd.f32 %v699_v63, %v618_v41 }
  0xd8   :  { %v184_v3 = vpop.f32.mrf.mxu0 }
  0xd9   :  { %v233_v4 = vpack.c.bf16 %v220_v1, %v219_v0  ;;  %v185_v7 = vadd.f32 %v618_v41, %v184_v3  ;;  %v225_v16 = vmax.f32 %v193_v9, 0.0 }
  0xda   :  { %v700_v6 = vpop.f32.mrf.mxu0 }
  0xdb   :  { %v196_v8 = vadd.f32 %v700_v6, %v618_v41  ;;  %725 = vmatprep.mubr.bf16.mxu1 %v233_v4  ;;  %v223_v14 = vmax.f32 %v185_v7, 0.0 }
  0xdc   :  { %v187_v10 = vpop.f32.mrf.mxu0  ;;  %726 = vmatmul.mubr.bf16.gmra.mxu1 %v234_v5 }
  0xdd   :  { %v188_v11 = vadd.f32 %v618_v41, %v187_v10  ;;  %v226_v12 = vmax.f32 %v196_v8, 0.0 }
  0xde   :  { %v703_v13 = vpop.f32.mrf.mxu0 }
  0xdf   :  { %v224_v15 = vmax.f32 %v188_v11, 0.0  ;;  %v236_v19 = vpack.c.bf16 %v226_v12, %v225_v16  ;;  %v209_v23 = vadd.f32 %v703_v13, %v618_v41 }
  0xe0   :  { %v200_v17 = vpop.f32.mrf.mxu0 }
  0xe1   :  { %v235_v18 = vpack.c.bf16 %v224_v15, %v223_v14  ;;  %v201_v21 = vadd.f32 %v618_v41, %v200_v17  ;;  %v229_v29 = vmax.f32 %v209_v23, 0.0 }
  0xe2   :  { %v704_v20 = vpop.f32.mrf.mxu0 }
  0xe3   :  { %v212_v22 = vadd.f32 %v704_v20, %v618_v41  ;;  %729 = vmatprep.mubr.bf16.mxu1 %v235_v18  ;;  %v227_v27 = vmax.f32 %v201_v21, 0.0 }
  0xe4   :  { %v203_v24 = vpop.f32.mrf.mxu0  ;;  %730 = vmatmul.mubr.bf16.gmra.mxu1 %v236_v19 }
  0xe5   :  { %v204_v25 = vadd.f32 %v618_v41, %v203_v24  ;;  %v230_v26 = vmax.f32 %v212_v22, 0.0 }
  0xe7   :  { %v228_v28 = vmax.f32 %v204_v25, 0.0  ;;  %v238_v31 = vpack.c.bf16 %v230_v26, %v229_v29 }
  0xe9   :  { %v237_v30 = vpack.c.bf16 %v228_v28, %v227_v27  ;;  %v969_v28 = vld [vmem:[%s1077_s5] ss:$0 sm:$0xff] }
  0xeb   :  { %733 = vmatprep.mubr.bf16.mxu1 %v237_v30 }
  0xec   :  { %734 = vmatmul.mubr.bf16.gmra.mxu1 %v238_v31 }
 0x194   :  { %v723_v35 = vpop.f32.mrf.mxu1 }
 0x195   :  { %v334_v41 = vadd.f32 %v723_v35, %v627_v37 }
 0x196   :  { %v325_v36 = vpop.f32.mrf.mxu1 }
 0x197   :  { %v326_v39 = vadd.f32 %v627_v37, %v325_v36  ;;  %v390_v48 = vmax.f32 %v334_v41, 0.0 }
 0x198   :  { %v724_v38 = vpop.f32.mrf.mxu1 }
 0x199   :  { %v337_v40 = vadd.f32 %v724_v38, %v627_v37  ;;  %v388_v46 = vmax.f32 %v326_v39, 0.0 }
 0x19a   :  { %v328_v42 = vpop.f32.mrf.mxu1 }
 0x19b   :  { %v329_v43 = vadd.f32 %v627_v37, %v328_v42  ;;  %v391_v44 = vmax.f32 %v337_v40, 0.0 }
 0x19c   :  { %v727_v45 = vpop.f32.mrf.mxu1 }
 0x19d   :  { %v389_v47 = vmax.f32 %v329_v43, 0.0  ;;  %v405_v51 = vpack.c.bf16 %v391_v44, %v390_v48  ;;  %v350_v55 = vadd.f32 %v727_v45, %v627_v37  ;;  %v981_v43 = vld [vmem:[%s1077_s5 + $0x1] ss:$0 sm:$0xff] }
 0x19e   :  { %v341_v49 = vpop.f32.mrf.mxu1 }
 0x19f   :  { %v404_v50 = vpack.c.bf16 %v389_v47, %v388_v46  ;;  %v342_v53 = vadd.f32 %v627_v37, %v341_v49  ;;  %v394_v62 = vmax.f32 %v350_v55, 0.0 }
 0x1a0   :  { %v728_v52 = vpop.f32.mrf.mxu1 }
 0x1a1   :  { %v353_v54 = vadd.f32 %v728_v52, %v627_v37  ;;  %753 = vmatprep.mubr.bf16.mxu0 %v404_v50  ;;  %v392_v60 = vmax.f32 %v342_v53, 0.0 }
 0x1a2   :  { %v344_v56 = vpop.f32.mrf.mxu1  ;;  %754 = vmatmul.mubr.bf16.vlgmr.msra.gmra.mxu0 %v405_v51 }
 0x1a3   :  { %v345_v57 = vadd.f32 %v627_v37, %v344_v56  ;;  %v395_v58 = vmax.f32 %v353_v54, 0.0 }
 0x1a4   :  { %v731_v59 = vpop.f32.mrf.mxu1 }
 0x1a5   :  { %v393_v61 = vmax.f32 %v345_v57, 0.0  ;;  %v407_v1 = vpack.c.bf16 %v395_v58, %v394_v62  ;;  %v366_v5 = vadd.f32 %v731_v59, %v627_v37 }
 0x1a6   :  { %v357_v63 = vpop.f32.mrf.mxu1 }
 0x1a7   :  { %v406_v0 = vpack.c.bf16 %v393_v61, %v392_v60  ;;  %v358_v3 = vadd.f32 %v627_v37, %v357_v63  ;;  %v398_v12 = vmax.f32 %v366_v5, 0.0 }
 0x1a8   :  { %v732_v2 = vpop.f32.mrf.mxu1 }
 0x1a9   :  { %v369_v4 = vadd.f32 %v732_v2, %v627_v37  ;;  %757 = vmatprep.mubr.bf16.mxu0 %v406_v0  ;;  %v396_v10 = vmax.f32 %v358_v3, 0.0 }
 0x1aa   :  { %v360_v6 = vpop.f32.mrf.mxu1  ;;  %758 = vmatmul.mubr.bf16.gmra.mxu0 %v407_v1 }
 0x1ab   :  { %v361_v7 = vadd.f32 %v627_v37, %v360_v6  ;;  %v399_v8 = vmax.f32 %v369_v4, 0.0 }
 0x1ac   :  { %v735_v9 = vpop.f32.mrf.mxu1 }
 0x1ad   :  { %v397_v11 = vmax.f32 %v361_v7, 0.0  ;;  %v409_v15 = vpack.c.bf16 %v399_v8, %v398_v12  ;;  %v382_v19 = vadd.f32 %v735_v9, %v627_v37 }
 0x1ae   :  { %v373_v13 = vpop.f32.mrf.mxu1 }
 0x1af   :  { %v408_v14 = vpack.c.bf16 %v397_v11, %v396_v10  ;;  %v374_v17 = vadd.f32 %v627_v37, %v373_v13  ;;  %v402_v25 = vmax.f32 %v382_v19, 0.0 }
 0x1b0   :  { %v736_v16 = vpop.f32.mrf.mxu1 }
 0x1b1   :  { %v385_v18 = vadd.f32 %v736_v16, %v627_v37  ;;  %761 = vmatprep.mubr.bf16.mxu0 %v408_v14  ;;  %v400_v23 = vmax.f32 %v374_v17, 0.0 }
 0x1b2   :  { %v376_v20 = vpop.f32.mrf.mxu1  ;;  %762 = vmatmul.mubr.bf16.gmra.mxu0 %v409_v15 }
 0x1b3   :  { %v377_v21 = vadd.f32 %v627_v37, %v376_v20  ;;  %v403_v22 = vmax.f32 %v385_v18, 0.0 }
 0x1b5   :  { %v401_v24 = vmax.f32 %v377_v21, 0.0  ;;  %v411_v27 = vpack.c.bf16 %v403_v22, %v402_v25 }
 0x1b7   :  { %v410_v26 = vpack.c.bf16 %v401_v24, %v400_v23 }
 0x1b9   :  { %765 = vmatprep.mubr.bf16.mxu0 %v410_v26 }
 0x1ba   :  { %766 = vmatmul.mubr.bf16.gmra.mxu0 %v411_v27 }
 0x262   :  { %v755_v29 = vpop.f32.mrf.mxu0 }
 0x263   :  { %v507_v30 = vadd.f32 %v755_v29, %v969_v28 }
 0x264   :  { %v498_v31 = vpop.f32.mrf.mxu0 }
 0x265   :  { %786 = vtanh.f32 %v507_v30  ;;  %v499_v32 = vadd.f32 %v969_v28, %v498_v31 }
 0x266   :  { %v756_v33 = vpop.f32.mrf.mxu0 }
 0x267   :  { %788 = vtanh.f32 %v499_v32  ;;  %v510_v34 = vadd.f32 %v756_v33, %v969_v28 }
 0x268   :  { %v501_v35 = vpop.f32.mrf.mxu0 }
 0x269   :  { %790 = vtanh.f32 %v510_v34  ;;  %v502_v36 = vadd.f32 %v969_v28, %v501_v35 }
 0x26a   :  { %v759_v37 = vpop.f32.mrf.mxu0 }
 0x26b   :  { %792 = vtanh.f32 %v502_v36  ;;  %v523_v38 = vadd.f32 %v759_v37, %v969_v28 }
 0x26c   :  { %v514_v39 = vpop.f32.mrf.mxu0 }
 0x26d   :  { %794 = vtanh.f32 %v523_v38  ;;  %v515_v40 = vadd.f32 %v969_v28, %v514_v39 }
 0x26e   :  { %v760_v41 = vpop.f32.mrf.mxu0 }
 0x26f   :  { %796 = vtanh.f32 %v515_v40  ;;  %v526_v42 = vadd.f32 %v760_v41, %v969_v28 }
 0x270   :  { %v517_v44 = vpop.f32.mrf.mxu0 }
 0x271   :  { %798 = vtanh.f32 %v526_v42  ;;  %v518_v45 = vadd.f32 %v969_v28, %v517_v44 }
 0x272   :  { %v787_v46 = vpop.eup %786  ;;  %v763_v47 = vpop.f32.mrf.mxu0 }
 0x273   :  { %v583_v48 = vmul.f32 %v787_v46, %v981_v43  ;;  %800 = vtanh.f32 %v518_v45  ;;  %v539_v49 = vadd.f32 %v763_v47, %v969_v28 }
 0x274   :  { %v789_v50 = vpop.eup %788  ;;  %v530_v51 = vpop.f32.mrf.mxu0 }
 0x275   :  { %600 = vst.msk [vmem:[%s1078_s6 + $0x10] sm:$0xff] %vm597_vm2, %v583_v48  ;;  %v581_v52 = vmul.f32 %v789_v50, %v981_v43  ;;  %802 = vtanh.f32 %v539_v49  ;;  %v531_v53 = vadd.f32 %v969_v28, %v530_v51 }
 0x276   :  { %v791_v54 = vpop.eup %790  ;;  %v764_v55 = vpop.f32.mrf.mxu0 }
 0x277   :  { %598 = vst.msk [vmem:[%s1078_s6] sm:$0xff] %vm597_vm2, %v581_v52  ;;  %v584_v56 = vmul.f32 %v791_v54, %v981_v43  ;;  %804 = vtanh.f32 %v531_v53  ;;  %v542_v57 = vadd.f32 %v764_v55, %v969_v28 }
 0x278   :  { %v793_v58 = vpop.eup %792  ;;  %v533_v59 = vpop.f32.mrf.mxu0 }
 0x279   :  { %601 = vst.msk [vmem:[%s1078_s6 + $0x18] sm:$0xff] %vm597_vm2, %v584_v56  ;;  %v582_v60 = vmul.f32 %v793_v58, %v981_v43  ;;  %806 = vtanh.f32 %v542_v57  ;;  %v534_v61 = vadd.f32 %v969_v28, %v533_v59 }
 0x27a   :  { %v795_v62 = vpop.eup %794  ;;  %v767_v63 = vpop.f32.mrf.mxu0 }
 0x27b   :  { %599 = vst.msk [vmem:[%s1078_s6 + $0x8] sm:$0xff] %vm597_vm2, %v582_v60  ;;  %v587_v0 = vmul.f32 %v795_v62, %v981_v43  ;;  %808 = vtanh.f32 %v534_v61  ;;  %v555_v1 = vadd.f32 %v767_v63, %v969_v28 }
 0x27c   :  { %v797_v2 = vpop.eup %796  ;;  %v546_v3 = vpop.f32.mrf.mxu0 }
 0x27d   :  { %604 = vst.msk [vmem:[%s1078_s6 + $0x30] sm:$0xff] %vm597_vm2, %v587_v0  ;;  %v585_v4 = vmul.f32 %v797_v2, %v981_v43  ;;  %810 = vtanh.f32 %v555_v1  ;;  %v547_v5 = vadd.f32 %v969_v28, %v546_v3 }
 0x27e   :  { %v799_v6 = vpop.eup %798  ;;  %v768_v7 = vpop.f32.mrf.mxu0 }
 0x27f   :  { %602 = vst.msk [vmem:[%s1078_s6 + $0x20] sm:$0xff] %vm597_vm2, %v585_v4  ;;  %v588_v8 = vmul.f32 %v799_v6, %v981_v43  ;;  %812 = vtanh.f32 %v547_v5  ;;  %v558_v9 = vadd.f32 %v768_v7, %v969_v28 }
 0x280   :  { %v801_v10 = vpop.eup %800  ;;  %v549_v11 = vpop.f32.mrf.mxu0 }
 0x281   :  { %605 = vst.msk [vmem:[%s1078_s6 + $0x38] sm:$0xff] %vm597_vm2, %v588_v8  ;;  %v586_v12 = vmul.f32 %v801_v10, %v981_v43  ;;  %814 = vtanh.f32 %v558_v9  ;;  %v550_v13 = vadd.f32 %v969_v28, %v549_v11 }
 0x282   :  { %v803_v14 = vpop.eup %802 }
 0x283   :  { %603 = vst.msk [vmem:[%s1078_s6 + $0x28] sm:$0xff] %vm597_vm2, %v586_v12  ;;  %v591_v15 = vmul.f32 %v803_v14, %v981_v43  ;;  %816 = vtanh.f32 %v550_v13 }
 0x284   :  { %v805_v16 = vpop.eup %804 }
 0x285   :  { %608 = vst.msk [vmem:[%s1078_s6 + $0x50] sm:$0xff] %vm597_vm2, %v591_v15  ;;  %v589_v17 = vmul.f32 %v805_v16, %v981_v43 }
 0x286   :  { %v807_v18 = vpop.eup %806 }
 0x287   :  { %606 = vst.msk [vmem:[%s1078_s6 + $0x40] sm:$0xff] %vm597_vm2, %v589_v17  ;;  %v592_v19 = vmul.f32 %v807_v18, %v981_v43 }
 0x288   :  { %v809_v20 = vpop.eup %808 }
 0x289   :  { %609 = vst.msk [vmem:[%s1078_s6 + $0x58] sm:$0xff] %vm597_vm2, %v592_v19  ;;  %v590_v21 = vmul.f32 %v809_v20, %v981_v43 }
 0x28a   :  { %v811_v22 = vpop.eup %810 }
 0x28b   :  { %607 = vst.msk [vmem:[%s1078_s6 + $0x48] sm:$0xff] %vm597_vm2, %v590_v21  ;;  %v595_v23 = vmul.f32 %v811_v22, %v981_v43 }
 0x28c   :  { %v813_v24 = vpop.eup %812 }
 0x28d   :  { %612 = vst.msk [vmem:[%s1078_s6 + $0x70] sm:$0xff] %vm597_vm2, %v595_v23  ;;  %v593_v25 = vmul.f32 %v813_v24, %v981_v43 }
 0x28e   :  { %v815_v26 = vpop.eup %814 }
 0x28f   :  { %610 = vst.msk [vmem:[%s1078_s6 + $0x60] sm:$0xff] %vm597_vm2, %v593_v25  ;;  %v596_v27 = vmul.f32 %v815_v26, %v981_v43 }
 0x290   :  { %v817_v28 = vpop.eup %816 }
 0x291   :  { %613 = vst.msk [vmem:[%s1078_s6 + $0x78] sm:$0xff] %vm597_vm2, %v596_v27  ;;  %v594_v29 = vmul.f32 %v817_v28, %v981_v43 }
 0x293   :  { %611 = vst.msk [vmem:[%s1078_s6 + $0x68] sm:$0xff] %vm597_vm2, %v594_v29 }

</bundles_post_ra>
